<compile_context>
chip_gen: v6e
topology: v6e:2x2x1
jax: 0.10.0
libtpu: 0.0.40
codegen_flags: <defaults>
</compile_context>

<pallas_src>
import functools

import jax
import jax.numpy as jnp
from jax.experimental import pallas as pl
from jax.experimental.pallas import tpu as pltpu


def _attention_kernel(x_ref, wq_ref, wk_ref, wv_ref, bq_ref, bk_ref, bv_ref,
                      w_out_ref, b_out_ref, o_ref,
                      q_scr, k_scr, v_scr, ctx_scr, *,
                      num_heads, batch_block, seq_len):
    """One grid step processes `batch_block` batch elements.

    x_ref            : (Bb, N, C) bf16   input block
    wq/wk/wv_ref     : (C, C)     bf16   weights, pre-transposed to (in, out);
                                         softmax scaling folded into wq
    bq/bk/bv_ref     : (1, C)     f32    biases (scaling folded into bq)
    w_out_ref        : (C, C)     bf16   out_proj weight, pre-transposed
    b_out_ref        : (1, C)     f32    out_proj bias
    o_ref            : (Bb, N, C)        output block (x's original dtype)
    q/k/v/ctx_scr    : (Bb, N, C) bf16   VMEM staging scratch
    """
    Bb, N = batch_block, seq_len
    C = x_ref.shape[-1]
    hd = C // num_heads
    M = Bb * N

    # One flattened (Bb*N, C) LHS for all three projections (bf16 operands,
    # f32 accumulation); biases added once, outside all loops; results staged
    # in VMEM scratch so the inner loops re-slice refs instead of keeping big
    # f32 values live across the whole nest.
    x = x_ref[...].reshape(M, C)
    q_scr[...] = (jnp.dot(x, wq_ref[...], preferred_element_type=jnp.float32)
                  + bq_ref[...]).reshape(Bb, N, C).astype(jnp.bfloat16)
    k_scr[...] = (jnp.dot(x, wk_ref[...], preferred_element_type=jnp.float32)
                  + bk_ref[...]).reshape(Bb, N, C).astype(jnp.bfloat16)
    v_scr[...] = (jnp.dot(x, wv_ref[...], preferred_element_type=jnp.float32)
                  + bv_ref[...]).reshape(Bb, N, C).astype(jnp.bfloat16)

    def batch_body(b, carry):
        # Dynamic index only on the untiled leading axis; lane slices stay static.
        for h in range(num_heads):                      # static unroll over heads
            cols = slice(h * hd, (h + 1) * hd)
            qh = q_scr[b, :, cols]                      # (N, hd) bf16
            kh = k_scr[b, :, cols]                      # (N, hd) bf16
            vh = v_scr[b, :, cols]                      # (N, hd) bf16

            # q @ k^T without materializing the transpose; scaling already in wq.
            s = jax.lax.dot_general(
                qh, kh, (((1,), (1,)), ((), ())),
                preferred_element_type=jnp.float32)     # (N, N) f32
            s = s - jnp.max(s, axis=-1, keepdims=True)
            p = jnp.exp(s)
            denom = jnp.sum(p, axis=-1, keepdims=True)  # (N, 1) f32

            # PV with unnormalized p, then normalize the (N, hd) result —
            # O(N*hd) instead of O(N^2) VPU work (matmul is linear in p).
            hv = jnp.dot(p.astype(jnp.bfloat16), vh,
                         preferred_element_type=jnp.float32)       # (N, hd) f32
            hv = hv * pl.reciprocal(denom, approx=True)

            # Stage this head's context; lane-contiguous column write.
            ctx_scr[b, :, cols] = hv.astype(jnp.bfloat16)
        return carry

    jax.lax.fori_loop(0, Bb, batch_body, 0)

    # Single consolidated out-projection: (Bb*N, C) @ (C, C), full K=C contraction.
    ctx = ctx_scr[...].reshape(M, C)
    out = (jnp.dot(ctx, w_out_ref[...], preferred_element_type=jnp.float32)
           + b_out_ref[...])
    o_ref[...] = out.reshape(Bb, N, C).astype(o_ref.dtype)


def _vmem_estimate_bytes(Bb, N, C):
    """Rough per-grid-step VMEM working set (bytes)."""
    m = Bb * N
    bf16, f32 = 2, 4
    in_x = 2 * m * C * bf16                       # x block, double-buffered
    out_o = 2 * m * C * f32                       # output block, double-buffered
    consts = 4 * C * C * bf16 + 4 * C * f32       # weights/biases, single-buffered
    scratch = 4 * m * C * bf16                    # q/k/v/ctx staging
    live = 2 * N * N * f32 + m * C * f32          # score temporaries + out temp
    return in_x + out_o + consts + scratch + live


def _pick_batch_block(B, N, C, *, target_rows=256, min_grid=2,
                      vmem_budget=40 * 1024 * 1024):
    """Divisor of B: grid >= min_grid if possible, >= target_rows MXU rows if the
    VMEM budget allows, never exceeding the budget."""
    max_block = max(1, B // min_grid) if B >= min_grid else B
    divisors = [d for d in range(1, B + 1) if B % d == 0 and d <= max_block]
    fitting = [d for d in divisors if _vmem_estimate_bytes(d, N, C) <= vmem_budget]
    if not fitting:
        fitting = [divisors[0]]
    for d in fitting:
        if d * N >= target_rows:
            return d
    return fitting[-1]


def attention_forward(x, w_in, b_in, w_out, b_out, *, num_heads, scaling=None,
                      batch_block=None):
    """x: (B, N, C); w_in: (3C, C); b_in: (3C,); w_out: (C, C); b_out: (C,)."""
    B, N, C = x.shape
    assert C % num_heads == 0
    hd = C // num_heads
    if scaling is None:
        scaling = hd ** (-0.5)
    scaling = float(scaling)
    out_dtype = x.dtype

    w_in = jnp.asarray(w_in, jnp.float32)
    b_in = jnp.asarray(b_in, jnp.float32)
    w_out = jnp.asarray(w_out, jnp.float32)
    b_out = jnp.asarray(b_out, jnp.float32)

    # Glue (trace time): split fused qkv weights, pre-transpose to (in, out),
    # fold the softmax scaling into the q projection, cast MXU operands to bf16,
    # keep biases f32 and 2D.
    wq = (w_in[0 * C:1 * C, :].T * scaling).astype(jnp.bfloat16)   # (C, C)
    wk = w_in[1 * C:2 * C, :].T.astype(jnp.bfloat16)               # (C, C)
    wv = w_in[2 * C:3 * C, :].T.astype(jnp.bfloat16)               # (C, C)
    bq = (b_in[0 * C:1 * C] * scaling).reshape(1, C)
    bk = b_in[1 * C:2 * C].reshape(1, C)
    bv = b_in[2 * C:3 * C].reshape(1, C)
    w_out_t = w_out.T.astype(jnp.bfloat16)                         # (C, C)
    b_out_2d = b_out.reshape(1, C)
    x_bf16 = x.astype(jnp.bfloat16)

    if batch_block is None:
        batch_block = _pick_batch_block(B, N, C)
    assert B % batch_block == 0
    grid = (B // batch_block,)

    vmem_est = _vmem_estimate_bytes(batch_block, N, C)
    vmem_limit = int(min(60 * 1024 * 1024, max(32 * 1024 * 1024, 2 * vmem_est)))

    kernel = functools.partial(_attention_kernel, num_heads=num_heads,
                               batch_block=batch_block, seq_len=N)

    # Constants (weights/biases): constant index_map + single buffer — no second
    # VMEM copy from the pipeline's default double buffering.
    const_spec_w = pl.BlockSpec((C, C), lambda i: (0, 0),
                                pipeline_mode=pl.Buffered(1))
    const_spec_b = pl.BlockSpec((1, C), lambda i: (0, 0),
                                pipeline_mode=pl.Buffered(1))

    return pl.pallas_call(
        kernel,
        out_shape=jax.ShapeDtypeStruct((B, N, C), out_dtype),
        grid_spec=pltpu.PrefetchScalarGridSpec(
            num_scalar_prefetch=0,
            grid=grid,
            in_specs=[
                pl.BlockSpec((batch_block, N, C), lambda i: (i, 0, 0)),   # x
                const_spec_w,   # wq (scaled)
                const_spec_w,   # wk
                const_spec_w,   # wv
                const_spec_b,   # bq (scaled)
                const_spec_b,   # bk
                const_spec_b,   # bv
                const_spec_w,   # w_out^T
                const_spec_b,   # b_out
            ],
            out_specs=pl.BlockSpec((batch_block, N, C), lambda i: (i, 0, 0)),
            scratch_shapes=[
                pltpu.VMEM((batch_block, N, C), jnp.bfloat16),   # q
                pltpu.VMEM((batch_block, N, C), jnp.bfloat16),   # k
                pltpu.VMEM((batch_block, N, C), jnp.bfloat16),   # v
                pltpu.VMEM((batch_block, N, C), jnp.bfloat16),   # ctx (head outputs)
            ],
        ),
        compiler_params=pltpu.CompilerParams(
            dimension_semantics=("parallel",),
            vmem_limit_bytes=vmem_limit),
    )(x_bf16, wq, wk, wv, bq, bk, bv, w_out_t, b_out_2d)


def attention_reference(x, w_in, b_in, w_out, b_out, *, num_heads, scaling=None):
    """Pure-JAX f32 reference mirroring the PyTorch forward exactly."""
    B, N, C = x.shape
    hd = C // num_heads
    if scaling is None:
        scaling = hd ** (-0.5)
    qkv = x @ w_in.T + b_in                                   # (B, N, 3C)
    qkv = qkv.reshape(B, N, 3, num_heads, hd)
    qkv = jnp.transpose(qkv, (2, 0, 3, 1, 4))                 # (3, B, H, N, hd)
    q, k, v = qkv[0], qkv[1], qkv[2]
    attn = jnp.einsum('bhnd,bhmd->bhnm', q, k) * scaling
    attn = jax.nn.softmax(attn, axis=-1)
    out = jnp.einsum('bhnm,bhmd->bhnd', attn, v)              # (B, H, N, hd)
    out = jnp.transpose(out, (0, 2, 1, 3)).reshape(B, N, C)
    return out @ w_out.T + b_out


if __name__ == "__main__":
    # Small shapes consistent with the module: B=2, N=8 tokens, dim=32, 4 heads.
    B, N, C = 2, 8, 32
    num_heads = 4

    key = jax.random.PRNGKey(0)
    kx, kw1, kb1, kw2, kb2 = jax.random.split(key, 5)

    x = jax.random.normal(kx, (B, N, C), dtype=jnp.float32)
    # Deterministic params (shapes follow nn.Linear(dim, dim*3) / nn.Linear(dim, dim)).
    w_in = jax.random.normal(kw1, (3 * C, C), dtype=jnp.float32) * 0.05
    b_in = jax.random.normal(kb1, (3 * C,), dtype=jnp.float32) * 0.05
    w_out = jax.random.normal(kw2, (C, C), dtype=jnp.float32) * 0.05
    b_out = jax.random.normal(kb2, (C,), dtype=jnp.float32) * 0.05

    out = attention_forward(x, w_in, b_in, w_out, b_out, num_heads=num_heads)
    out = jax.block_until_ready(out)

    ref = attention_reference(x, w_in, b_in, w_out, b_out, num_heads=num_heads)
    assert out.shape == (B, N, C)
    # Tolerance covers bf16 MXU operands + approx reciprocal in the softmax denom.
    assert jnp.allclose(out, ref, atol=2e-2, rtol=2e-2), "mismatch vs reference"

    print("KERNEL_OK")
</pallas_src>

<mosaic_0001>
module attributes {stable_mosaic.version = 11 : i64} {
  func.func @_attention_kernel(%arg0: i32, %arg1: memref<1x8x32xbf16, #tpu.memory_space<vmem>>, %arg2: memref<32x32xbf16, #tpu.memory_space<vmem>>, %arg3: memref<32x32xbf16, #tpu.memory_space<vmem>>, %arg4: memref<32x32xbf16, #tpu.memory_space<vmem>>, %arg5: memref<1x32xf32, #tpu.memory_space<vmem>>, %arg6: memref<1x32xf32, #tpu.memory_space<vmem>>, %arg7: memref<1x32xf32, #tpu.memory_space<vmem>>, %arg8: memref<32x32xbf16, #tpu.memory_space<vmem>>, %arg9: memref<1x32xf32, #tpu.memory_space<vmem>>, %arg10: memref<1x8x32xf32, #tpu.memory_space<vmem>>, %arg11: memref<1x8x32xbf16, #tpu.memory_space<vmem>>, %arg12: memref<1x8x32xbf16, #tpu.memory_space<vmem>>, %arg13: memref<1x8x32xbf16, #tpu.memory_space<vmem>>, %arg14: memref<1x8x32xbf16, #tpu.memory_space<vmem>>) attributes {dimension_semantics = [#tpu.dimension_semantics<parallel>], iteration_bounds = array<i64: 2>, scalar_prefetch = 0 : i64, scratch_operands = 4 : i64, tpu.core_type = #tpu.core_type<tc>, window_params = [{transform_indices = @transform_0, window_bounds = array<i64: 1, 8, 32>}, {pipeline_mode = #tpu.pipeline_mode<synchronous>, transform_indices = @transform_1, window_bounds = array<i64: 32, 32>}, {pipeline_mode = #tpu.pipeline_mode<synchronous>, transform_indices = @transform_2, window_bounds = array<i64: 32, 32>}, {pipeline_mode = #tpu.pipeline_mode<synchronous>, transform_indices = @transform_3, window_bounds = array<i64: 32, 32>}, {pipeline_mode = #tpu.pipeline_mode<synchronous>, transform_indices = @transform_4, window_bounds = array<i64: 1, 32>}, {pipeline_mode = #tpu.pipeline_mode<synchronous>, transform_indices = @transform_5, window_bounds = array<i64: 1, 32>}, {pipeline_mode = #tpu.pipeline_mode<synchronous>, transform_indices = @transform_6, window_bounds = array<i64: 1, 32>}, {pipeline_mode = #tpu.pipeline_mode<synchronous>, transform_indices = @transform_7, window_bounds = array<i64: 32, 32>}, {pipeline_mode = #tpu.pipeline_mode<synchronous>, transform_indices = @transform_8, window_bounds = array<i64: 1, 32>}, {transform_indices = @transform_9, window_bounds = array<i64: 1, 8, 32>}]} {
    %c0 = arith.constant 0 : index
    %c0_0 = arith.constant 0 : index
    %c0_1 = arith.constant 0 : index
    %0 = vector.load %arg1[%c0, %c0_0, %c0_1] : memref<1x8x32xbf16, #tpu.memory_space<vmem>>, vector<1x8x32xbf16>
    %1 = vector.shape_cast %0 : vector<1x8x32xbf16> to vector<8x32xbf16>
    %c0_2 = arith.constant 0 : index
    %c0_3 = arith.constant 0 : index
    %2 = vector.load %arg2[%c0_2, %c0_3] : memref<32x32xbf16, #tpu.memory_space<vmem>>, vector<32x32xbf16>
    %cst = arith.constant dense<0.000000e+00> : vector<8x32xf32>
    %3 = tpu.matmul %1, %2, %cst {dimension_numbers = #tpu.dot_dimension_numbers<[1], [0], [0], [1], [0, 0, 1, 1], [], []>} : vector<8x32xbf16>, vector<32x32xbf16>, vector<8x32xf32> -> vector<8x32xf32>
    %c0_4 = arith.constant 0 : index
    %c0_5 = arith.constant 0 : index
    %4 = vector.load %arg5[%c0_4, %c0_5] : memref<1x32xf32, #tpu.memory_space<vmem>>, vector<1x32xf32>
    %5 = vector.broadcast %4 : vector<1x32xf32> to vector<8x32xf32>
    %6 = arith.addf %3, %5 : vector<8x32xf32>
    %7 = vector.shape_cast %6 : vector<8x32xf32> to vector<1x8x32xf32>
    %8 = arith.truncf %7 : vector<1x8x32xf32> to vector<1x8x32xbf16>
    %c0_6 = arith.constant 0 : index
    %c0_7 = arith.constant 0 : index
    %c0_8 = arith.constant 0 : index
    %9 = vector.load %arg11[%c0_6, %c0_7, %c0_8] : memref<1x8x32xbf16, #tpu.memory_space<vmem>>, vector<1x8x32xbf16>
    tpu.vector_store %arg11[%c0_6, %c0_7, %c0_8], %8 {strides = array<i32>} : memref<1x8x32xbf16, #tpu.memory_space<vmem>>, vector<1x8x32xbf16>,
    %c0_9 = arith.constant 0 : index
    %c0_10 = arith.constant 0 : index
    %10 = vector.load %arg3[%c0_9, %c0_10] : memref<32x32xbf16, #tpu.memory_space<vmem>>, vector<32x32xbf16>
    %cst_11 = arith.constant dense<0.000000e+00> : vector<8x32xf32>
    %11 = tpu.matmul %1, %10, %cst_11 {dimension_numbers = #tpu.dot_dimension_numbers<[1], [0], [0], [1], [0, 0, 1, 1], [], []>} : vector<8x32xbf16>, vector<32x32xbf16>, vector<8x32xf32> -> vector<8x32xf32>
    %c0_12 = arith.constant 0 : index
    %c0_13 = arith.constant 0 : index
    %12 = vector.load %arg6[%c0_12, %c0_13] : memref<1x32xf32, #tpu.memory_space<vmem>>, vector<1x32xf32>
    %13 = vector.broadcast %12 : vector<1x32xf32> to vector<8x32xf32>
    %14 = arith.addf %11, %13 : vector<8x32xf32>
    %15 = vector.shape_cast %14 : vector<8x32xf32> to vector<1x8x32xf32>
    %16 = arith.truncf %15 : vector<1x8x32xf32> to vector<1x8x32xbf16>
    %c0_14 = arith.constant 0 : index
    %c0_15 = arith.constant 0 : index
    %c0_16 = arith.constant 0 : index
    %17 = vector.load %arg12[%c0_14, %c0_15, %c0_16] : memref<1x8x32xbf16, #tpu.memory_space<vmem>>, vector<1x8x32xbf16>
    tpu.vector_store %arg12[%c0_14, %c0_15, %c0_16], %16 {strides = array<i32>} : memref<1x8x32xbf16, #tpu.memory_space<vmem>>, vector<1x8x32xbf16>,
    %c0_17 = arith.constant 0 : index
    %c0_18 = arith.constant 0 : index
    %18 = vector.load %arg4[%c0_17, %c0_18] : memref<32x32xbf16, #tpu.memory_space<vmem>>, vector<32x32xbf16>
    %cst_19 = arith.constant dense<0.000000e+00> : vector<8x32xf32>
    %19 = tpu.matmul %1, %18, %cst_19 {dimension_numbers = #tpu.dot_dimension_numbers<[1], [0], [0], [1], [0, 0, 1, 1], [], []>} : vector<8x32xbf16>, vector<32x32xbf16>, vector<8x32xf32> -> vector<8x32xf32>
    %c0_20 = arith.constant 0 : index
    %c0_21 = arith.constant 0 : index
    %20 = vector.load %arg7[%c0_20, %c0_21] : memref<1x32xf32, #tpu.memory_space<vmem>>, vector<1x32xf32>
    %21 = vector.broadcast %20 : vector<1x32xf32> to vector<8x32xf32>
    %22 = arith.addf %19, %21 : vector<8x32xf32>
    %23 = vector.shape_cast %22 : vector<8x32xf32> to vector<1x8x32xf32>
    %24 = arith.truncf %23 : vector<1x8x32xf32> to vector<1x8x32xbf16>
    %c0_22 = arith.constant 0 : index
    %c0_23 = arith.constant 0 : index
    %c0_24 = arith.constant 0 : index
    %25 = vector.load %arg13[%c0_22, %c0_23, %c0_24] : memref<1x8x32xbf16, #tpu.memory_space<vmem>>, vector<1x8x32xbf16>
    tpu.vector_store %arg13[%c0_22, %c0_23, %c0_24], %24 {strides = array<i32>} : memref<1x8x32xbf16, #tpu.memory_space<vmem>>, vector<1x8x32xbf16>,
    %c0_i32 = arith.constant 0 : i32
    %26 = arith.index_cast %c0_i32 : i32 to index
    %c0_25 = arith.constant 0 : index
    %c0_26 = arith.constant 0 : index
    %27 = vector.load %arg11[%26, %c0_25, %c0_26] : memref<1x8x32xbf16, #tpu.memory_space<vmem>>, vector<1x8x8xbf16>
    %28 = vector.shape_cast %27 : vector<1x8x8xbf16> to vector<8x8xbf16>
    %29 = arith.index_cast %c0_i32 : i32 to index
    %c0_27 = arith.constant 0 : index
    %c0_28 = arith.constant 0 : index
    %30 = vector.load %arg12[%29, %c0_27, %c0_28] : memref<1x8x32xbf16, #tpu.memory_space<vmem>>, vector<1x8x8xbf16>
    %31 = vector.shape_cast %30 : vector<1x8x8xbf16> to vector<8x8xbf16>
    %32 = arith.index_cast %c0_i32 : i32 to index
    %c0_29 = arith.constant 0 : index
    %c0_30 = arith.constant 0 : index
    %33 = vector.load %arg13[%32, %c0_29, %c0_30] : memref<1x8x32xbf16, #tpu.memory_space<vmem>>, vector<1x8x8xbf16>
    %34 = vector.shape_cast %33 : vector<1x8x8xbf16> to vector<8x8xbf16>
    %cst_31 = arith.constant dense<0.000000e+00> : vector<8x8xf32>
    %35 = tpu.matmul %28, %31, %cst_31 {dimension_numbers = #tpu.dot_dimension_numbers<[1], [1], [0], [0], [0, 0, 1, 0], [], []>} : vector<8x8xbf16>, vector<8x8xbf16>, vector<8x8xf32> -> vector<8x8xf32>
    %cst_32 = arith.constant dense<0xFF800000> : vector<8xf32>
    %36 = vector.multi_reduction <maximumf>, %35, %cst_32 [1] : vector<8x8xf32> to vector<8xf32>
    %37 = vector.shape_cast %36 : vector<8xf32> to vector<8x1xf32>
    %38 = vector.broadcast %37 : vector<8x1xf32> to vector<8x8xf32>
    %39 = arith.subf %35, %38 : vector<8x8xf32>
    %40 = math.exp %39 : vector<8x8xf32>
    %cst_33 = arith.constant dense<0.000000e+00> : vector<8xf32>
    %41 = vector.multi_reduction <add>, %40, %cst_33 [1] : vector<8x8xf32> to vector<8xf32>
    %42 = vector.shape_cast %41 : vector<8xf32> to vector<8x1xf32>
    %43 = arith.truncf %40 : vector<8x8xf32> to vector<8x8xbf16>
    %cst_34 = arith.constant dense<0.000000e+00> : vector<8x8xf32>
    %44 = tpu.matmul %43, %34, %cst_34 {dimension_numbers = #tpu.dot_dimension_numbers<[1], [0], [0], [1], [0, 0, 1, 1], [], []>} : vector<8x8xbf16>, vector<8x8xbf16>, vector<8x8xf32> -> vector<8x8xf32>
    %45 = tpu.reciprocal %42 {approx = true} : vector<8x1xf32> -> vector<8x1xf32>
    %46 = vector.broadcast %45 : vector<8x1xf32> to vector<8x8xf32>
    %47 = arith.mulf %44, %46 : vector<8x8xf32>
    %48 = arith.truncf %47 : vector<8x8xf32> to vector<8x8xbf16>
    %49 = arith.index_cast %c0_i32 : i32 to index
    %c0_35 = arith.constant 0 : index
    %c0_36 = arith.constant 0 : index
    %50 = vector.load %arg14[%49, %c0_35, %c0_36] : memref<1x8x32xbf16, #tpu.memory_space<vmem>>, vector<1x8x8xbf16>
    %51 = vector.shape_cast %50 : vector<1x8x8xbf16> to vector<8x8xbf16>
    %52 = vector.shape_cast %48 : vector<8x8xbf16> to vector<1x8x8xbf16>
    tpu.vector_store %arg14[%49, %c0_35, %c0_36], %52 {strides = array<i32>} : memref<1x8x32xbf16, #tpu.memory_space<vmem>>, vector<1x8x8xbf16>,
    %53 = arith.index_cast %c0_i32 : i32 to index
    %c0_37 = arith.constant 0 : index
    %c8 = arith.constant 8 : index
    %54 = vector.load %arg11[%53, %c0_37, %c8] : memref<1x8x32xbf16, #tpu.memory_space<vmem>>, vector<1x8x8xbf16>
    %55 = vector.shape_cast %54 : vector<1x8x8xbf16> to vector<8x8xbf16>
    %56 = arith.index_cast %c0_i32 : i32 to index
    %c0_38 = arith.constant 0 : index
    %c8_39 = arith.constant 8 : index
    %57 = vector.load %arg12[%56, %c0_38, %c8_39] : memref<1x8x32xbf16, #tpu.memory_space<vmem>>, vector<1x8x8xbf16>
    %58 = vector.shape_cast %57 : vector<1x8x8xbf16> to vector<8x8xbf16>
    %59 = arith.index_cast %c0_i32 : i32 to index
    %c0_40 = arith.constant 0 : index
    %c8_41 = arith.constant 8 : index
    %60 = vector.load %arg13[%59, %c0_40, %c8_41] : memref<1x8x32xbf16, #tpu.memory_space<vmem>>, vector<1x8x8xbf16>
    %61 = vector.shape_cast %60 : vector<1x8x8xbf16> to vector<8x8xbf16>
    %cst_42 = arith.constant dense<0.000000e+00> : vector<8x8xf32>
    %62 = tpu.matmul %55, %58, %cst_42 {dimension_numbers = #tpu.dot_dimension_numbers<[1], [1], [0], [0], [0, 0, 1, 0], [], []>} : vector<8x8xbf16>, vector<8x8xbf16>, vector<8x8xf32> -> vector<8x8xf32>
    %cst_43 = arith.constant dense<0xFF800000> : vector<8xf32>
    %63 = vector.multi_reduction <maximumf>, %62, %cst_43 [1] : vector<8x8xf32> to vector<8xf32>
    %64 = vector.shape_cast %63 : vector<8xf32> to vector<8x1xf32>
    %65 = vector.broadcast %64 : vector<8x1xf32> to vector<8x8xf32>
    %66 = arith.subf %62, %65 : vector<8x8xf32>
    %67 = math.exp %66 : vector<8x8xf32>
    %cst_44 = arith.constant dense<0.000000e+00> : vector<8xf32>
    %68 = vector.multi_reduction <add>, %67, %cst_44 [1] : vector<8x8xf32> to vector<8xf32>
    %69 = vector.shape_cast %68 : vector<8xf32> to vector<8x1xf32>
    %70 = arith.truncf %67 : vector<8x8xf32> to vector<8x8xbf16>
    %cst_45 = arith.constant dense<0.000000e+00> : vector<8x8xf32>
    %71 = tpu.matmul %70, %61, %cst_45 {dimension_numbers = #tpu.dot_dimension_numbers<[1], [0], [0], [1], [0, 0, 1, 1], [], []>} : vector<8x8xbf16>, vector<8x8xbf16>, vector<8x8xf32> -> vector<8x8xf32>
    %72 = tpu.reciprocal %69 {approx = true} : vector<8x1xf32> -> vector<8x1xf32>
    %73 = vector.broadcast %72 : vector<8x1xf32> to vector<8x8xf32>
    %74 = arith.mulf %71, %73 : vector<8x8xf32>
    %75 = arith.truncf %74 : vector<8x8xf32> to vector<8x8xbf16>
    %76 = arith.index_cast %c0_i32 : i32 to index
    %c0_46 = arith.constant 0 : index
    %c8_47 = arith.constant 8 : index
    %77 = vector.load %arg14[%76, %c0_46, %c8_47] : memref<1x8x32xbf16, #tpu.memory_space<vmem>>, vector<1x8x8xbf16>
    %78 = vector.shape_cast %77 : vector<1x8x8xbf16> to vector<8x8xbf16>
    %79 = vector.shape_cast %75 : vector<8x8xbf16> to vector<1x8x8xbf16>
    tpu.vector_store %arg14[%76, %c0_46, %c8_47], %79 {strides = array<i32>} : memref<1x8x32xbf16, #tpu.memory_space<vmem>>, vector<1x8x8xbf16>,
    %80 = arith.index_cast %c0_i32 : i32 to index
    %c0_48 = arith.constant 0 : index
    %c16 = arith.constant 16 : index
    %81 = vector.load %arg11[%80, %c0_48, %c16] : memref<1x8x32xbf16, #tpu.memory_space<vmem>>, vector<1x8x8xbf16>
    %82 = vector.shape_cast %81 : vector<1x8x8xbf16> to vector<8x8xbf16>
    %83 = arith.index_cast %c0_i32 : i32 to index
    %c0_49 = arith.constant 0 : index
    %c16_50 = arith.constant 16 : index
    %84 = vector.load %arg12[%83, %c0_49, %c16_50] : memref<1x8x32xbf16, #tpu.memory_space<vmem>>, vector<1x8x8xbf16>
    %85 = vector.shape_cast %84 : vector<1x8x8xbf16> to vector<8x8xbf16>
    %86 = arith.index_cast %c0_i32 : i32 to index
    %c0_51 = arith.constant 0 : index
    %c16_52 = arith.constant 16 : index
    %87 = vector.load %arg13[%86, %c0_51, %c16_52] : memref<1x8x32xbf16, #tpu.memory_space<vmem>>, vector<1x8x8xbf16>
    %88 = vector.shape_cast %87 : vector<1x8x8xbf16> to vector<8x8xbf16>
    %cst_53 = arith.constant dense<0.000000e+00> : vector<8x8xf32>
    %89 = tpu.matmul %82, %85, %cst_53 {dimension_numbers = #tpu.dot_dimension_numbers<[1], [1], [0], [0], [0, 0, 1, 0], [], []>} : vector<8x8xbf16>, vector<8x8xbf16>, vector<8x8xf32> -> vector<8x8xf32>
    %cst_54 = arith.constant dense<0xFF800000> : vector<8xf32>
    %90 = vector.multi_reduction <maximumf>, %89, %cst_54 [1] : vector<8x8xf32> to vector<8xf32>
    %91 = vector.shape_cast %90 : vector<8xf32> to vector<8x1xf32>
    %92 = vector.broadcast %91 : vector<8x1xf32> to vector<8x8xf32>
    %93 = arith.subf %89, %92 : vector<8x8xf32>
    %94 = math.exp %93 : vector<8x8xf32>
    %cst_55 = arith.constant dense<0.000000e+00> : vector<8xf32>
    %95 = vector.multi_reduction <add>, %94, %cst_55 [1] : vector<8x8xf32> to vector<8xf32>
    %96 = vector.shape_cast %95 : vector<8xf32> to vector<8x1xf32>
    %97 = arith.truncf %94 : vector<8x8xf32> to vector<8x8xbf16>
    %cst_56 = arith.constant dense<0.000000e+00> : vector<8x8xf32>
    %98 = tpu.matmul %97, %88, %cst_56 {dimension_numbers = #tpu.dot_dimension_numbers<[1], [0], [0], [1], [0, 0, 1, 1], [], []>} : vector<8x8xbf16>, vector<8x8xbf16>, vector<8x8xf32> -> vector<8x8xf32>
    %99 = tpu.reciprocal %96 {approx = true} : vector<8x1xf32> -> vector<8x1xf32>
    %100 = vector.broadcast %99 : vector<8x1xf32> to vector<8x8xf32>
    %101 = arith.mulf %98, %100 : vector<8x8xf32>
    %102 = arith.truncf %101 : vector<8x8xf32> to vector<8x8xbf16>
    %103 = arith.index_cast %c0_i32 : i32 to index
    %c0_57 = arith.constant 0 : index
    %c16_58 = arith.constant 16 : index
    %104 = vector.load %arg14[%103, %c0_57, %c16_58] : memref<1x8x32xbf16, #tpu.memory_space<vmem>>, vector<1x8x8xbf16>
    %105 = vector.shape_cast %104 : vector<1x8x8xbf16> to vector<8x8xbf16>
    %106 = vector.shape_cast %102 : vector<8x8xbf16> to vector<1x8x8xbf16>
    tpu.vector_store %arg14[%103, %c0_57, %c16_58], %106 {strides = array<i32>} : memref<1x8x32xbf16, #tpu.memory_space<vmem>>, vector<1x8x8xbf16>,
    %107 = arith.index_cast %c0_i32 : i32 to index
    %c0_59 = arith.constant 0 : index
    %c24 = arith.constant 24 : index
    %108 = vector.load %arg11[%107, %c0_59, %c24] : memref<1x8x32xbf16, #tpu.memory_space<vmem>>, vector<1x8x8xbf16>
    %109 = vector.shape_cast %108 : vector<1x8x8xbf16> to vector<8x8xbf16>
    %110 = arith.index_cast %c0_i32 : i32 to index
    %c0_60 = arith.constant 0 : index
    %c24_61 = arith.constant 24 : index
    %111 = vector.load %arg12[%110, %c0_60, %c24_61] : memref<1x8x32xbf16, #tpu.memory_space<vmem>>, vector<1x8x8xbf16>
    %112 = vector.shape_cast %111 : vector<1x8x8xbf16> to vector<8x8xbf16>
    %113 = arith.index_cast %c0_i32 : i32 to index
    %c0_62 = arith.constant 0 : index
    %c24_63 = arith.constant 24 : index
    %114 = vector.load %arg13[%113, %c0_62, %c24_63] : memref<1x8x32xbf16, #tpu.memory_space<vmem>>, vector<1x8x8xbf16>
    %115 = vector.shape_cast %114 : vector<1x8x8xbf16> to vector<8x8xbf16>
    %cst_64 = arith.constant dense<0.000000e+00> : vector<8x8xf32>
    %116 = tpu.matmul %109, %112, %cst_64 {dimension_numbers = #tpu.dot_dimension_numbers<[1], [1], [0], [0], [0, 0, 1, 0], [], []>} : vector<8x8xbf16>, vector<8x8xbf16>, vector<8x8xf32> -> vector<8x8xf32>
    %cst_65 = arith.constant dense<0xFF800000> : vector<8xf32>
    %117 = vector.multi_reduction <maximumf>, %116, %cst_65 [1] : vector<8x8xf32> to vector<8xf32>
    %118 = vector.shape_cast %117 : vector<8xf32> to vector<8x1xf32>
    %119 = vector.broadcast %118 : vector<8x1xf32> to vector<8x8xf32>
    %120 = arith.subf %116, %119 : vector<8x8xf32>
    %121 = math.exp %120 : vector<8x8xf32>
    %cst_66 = arith.constant dense<0.000000e+00> : vector<8xf32>
    %122 = vector.multi_reduction <add>, %121, %cst_66 [1] : vector<8x8xf32> to vector<8xf32>
    %123 = vector.shape_cast %122 : vector<8xf32> to vector<8x1xf32>
    %124 = arith.truncf %121 : vector<8x8xf32> to vector<8x8xbf16>
    %cst_67 = arith.constant dense<0.000000e+00> : vector<8x8xf32>
    %125 = tpu.matmul %124, %115, %cst_67 {dimension_numbers = #tpu.dot_dimension_numbers<[1], [0], [0], [1], [0, 0, 1, 1], [], []>} : vector<8x8xbf16>, vector<8x8xbf16>, vector<8x8xf32> -> vector<8x8xf32>
    %126 = tpu.reciprocal %123 {approx = true} : vector<8x1xf32> -> vector<8x1xf32>
    %127 = vector.broadcast %126 : vector<8x1xf32> to vector<8x8xf32>
    %128 = arith.mulf %125, %127 : vector<8x8xf32>
    %129 = arith.truncf %128 : vector<8x8xf32> to vector<8x8xbf16>
    %130 = arith.index_cast %c0_i32 : i32 to index
    %c0_68 = arith.constant 0 : index
    %c24_69 = arith.constant 24 : index
    %131 = vector.load %arg14[%130, %c0_68, %c24_69] : memref<1x8x32xbf16, #tpu.memory_space<vmem>>, vector<1x8x8xbf16>
    %132 = vector.shape_cast %131 : vector<1x8x8xbf16> to vector<8x8xbf16>
    %133 = vector.shape_cast %129 : vector<8x8xbf16> to vector<1x8x8xbf16>
    tpu.vector_store %arg14[%130, %c0_68, %c24_69], %133 {strides = array<i32>} : memref<1x8x32xbf16, #tpu.memory_space<vmem>>, vector<1x8x8xbf16>,
    %c1_i32 = arith.constant 1 : i32
    %c0_70 = arith.constant 0 : index
    %c0_71 = arith.constant 0 : index
    %c0_72 = arith.constant 0 : index
    %134 = vector.load %arg14[%c0_70, %c0_71, %c0_72] : memref<1x8x32xbf16, #tpu.memory_space<vmem>>, vector<1x8x32xbf16>
    %135 = vector.shape_cast %134 : vector<1x8x32xbf16> to vector<8x32xbf16>
    %c0_73 = arith.constant 0 : index
    %c0_74 = arith.constant 0 : index
    %136 = vector.load %arg8[%c0_73, %c0_74] : memref<32x32xbf16, #tpu.memory_space<vmem>>, vector<32x32xbf16>
    %cst_75 = arith.constant dense<0.000000e+00> : vector<8x32xf32>
    %137 = tpu.matmul %135, %136, %cst_75 {dimension_numbers = #tpu.dot_dimension_numbers<[1], [0], [0], [1], [0, 0, 1, 1], [], []>} : vector<8x32xbf16>, vector<32x32xbf16>, vector<8x32xf32> -> vector<8x32xf32>
    %c0_76 = arith.constant 0 : index
    %c0_77 = arith.constant 0 : index
    %138 = vector.load %arg9[%c0_76, %c0_77] : memref<1x32xf32, #tpu.memory_space<vmem>>, vector<1x32xf32>
    %139 = vector.broadcast %138 : vector<1x32xf32> to vector<8x32xf32>
    %140 = arith.addf %137, %139 : vector<8x32xf32>
    %141 = vector.shape_cast %140 : vector<8x32xf32> to vector<1x8x32xf32>
    %c0_78 = arith.constant 0 : index
    %c0_79 = arith.constant 0 : index
    %c0_80 = arith.constant 0 : index
    %142 = vector.load %arg10[%c0_78, %c0_79, %c0_80] : memref<1x8x32xf32, #tpu.memory_space<vmem>>, vector<1x8x32xf32>
    tpu.vector_store %arg10[%c0_78, %c0_79, %c0_80], %141 {strides = array<i32>} : memref<1x8x32xf32, #tpu.memory_space<vmem>>, vector<1x8x32xf32>,
    return
  }
  func.func @transform_0(%arg0: i32) -> (i32, i32, i32) {
    %c0_i32 = arith.constant 0 : i32
    %c0_i32_0 = arith.constant 0 : i32
    %c0_i32_1 = arith.constant 0 : i32
    return %arg0, %c0_i32, %c0_i32_0 : i32, i32, i32
  }
  func.func @transform_1(%arg0: i32) -> (i32, i32) {
    %c0_i32 = arith.constant 0 : i32
    %c0_i32_0 = arith.constant 0 : i32
    %c0_i32_1 = arith.constant 0 : i32
    return %c0_i32, %c0_i32_0 : i32, i32
  }
  func.func @transform_2(%arg0: i32) -> (i32, i32) {
    %c0_i32 = arith.constant 0 : i32
    %c0_i32_0 = arith.constant 0 : i32
    %c0_i32_1 = arith.constant 0 : i32
    return %c0_i32, %c0_i32_0 : i32, i32
  }
  func.func @transform_3(%arg0: i32) -> (i32, i32) {
    %c0_i32 = arith.constant 0 : i32
    %c0_i32_0 = arith.constant 0 : i32
    %c0_i32_1 = arith.constant 0 : i32
    return %c0_i32, %c0_i32_0 : i32, i32
  }
  func.func @transform_4(%arg0: i32) -> (i32, i32) {
    %c0_i32 = arith.constant 0 : i32
    %c0_i32_0 = arith.constant 0 : i32
    %c0_i32_1 = arith.constant 0 : i32
    return %c0_i32, %c0_i32_0 : i32, i32
  }
  func.func @transform_5(%arg0: i32) -> (i32, i32) {
    %c0_i32 = arith.constant 0 : i32
    %c0_i32_0 = arith.constant 0 : i32
    %c0_i32_1 = arith.constant 0 : i32
    return %c0_i32, %c0_i32_0 : i32, i32
  }
  func.func @transform_6(%arg0: i32) -> (i32, i32) {
    %c0_i32 = arith.constant 0 : i32
    %c0_i32_0 = arith.constant 0 : i32
    %c0_i32_1 = arith.constant 0 : i32
    return %c0_i32, %c0_i32_0 : i32, i32
  }
  func.func @transform_7(%arg0: i32) -> (i32, i32) {
    %c0_i32 = arith.constant 0 : i32
    %c0_i32_0 = arith.constant 0 : i32
    %c0_i32_1 = arith.constant 0 : i32
    return %c0_i32, %c0_i32_0 : i32, i32
  }
  func.func @transform_8(%arg0: i32) -> (i32, i32) {
    %c0_i32 = arith.constant 0 : i32
    %c0_i32_0 = arith.constant 0 : i32
    %c0_i32_1 = arith.constant 0 : i32
    return %c0_i32, %c0_i32_0 : i32, i32
  }
  func.func @transform_9(%arg0: i32) -> (i32, i32, i32) {
    %c0_i32 = arith.constant 0 : i32
    %c0_i32_0 = arith.constant 0 : i32
    %c0_i32_1 = arith.constant 0 : i32
    return %arg0, %c0_i32, %c0_i32_0 : i32, i32, i32
  }
}

</mosaic_0001>

<bundles_post_ra>
// kernel: tpu_custom_call.1
= control target key start
LH: loop header
LB: loop body
LE: loop exit
PB: predicated region body
PF: predicated region fallthrough
CT: control target
= control target key end

     0   :  { %s2193_s0 = inlined_call_operand.hbm [shape: bf16[2,8,32], index: 0, kind: input, shape index: {}]   ;;  %s2194_s1 = inlined_call_operand.hbm [shape: bf16[32,32], index: 1, kind: input, shape index: {}]   ;;  %s2195_s2 = inlined_call_operand.hbm [shape: bf16[32,32], index: 2, kind: input, shape index: {}]   ;;  %s2196_s3 = inlined_call_operand.hbm [shape: bf16[32,32], index: 3, kind: input, shape index: {}]   ;;  %s2197_s4 = inlined_call_operand.vmem [shape: f32[1,32], index: 4, kind: input, shape index: {}]   ;;  %s2198_s5 = inlined_call_operand.vmem [shape: f32[1,32], index: 5, kind: input, shape index: {}]   ;;  %s2199_s6 = inlined_call_operand.vmem [shape: f32[1,32], index: 6, kind: input, shape index: {}]   ;;  %s2200_s7 = inlined_call_operand.hbm [shape: bf16[32,32], index: 7, kind: input, shape index: {}]   ;;  %s2201_s8 = inlined_call_operand.vmem [shape: f32[1,32], index: 8, kind: input, shape index: {}]   ;;  %s2202_s9 = inlined_call_operand.hbm [shape: f32[2,8,32], index: 9, kind: output, shape index: {}]  }
   0x1   :  { %2207 = sst [smem:[#allocation20_spill]] %s2194_s1 }
   0x2   :  { %2208 = sst [smem:[#allocation21_spill]] %s2195_s2 }
   0x3   :  { %2209 = sst [smem:[#allocation22_spill]] %s2196_s3 }
   0x4   :  { %2210 = sst [smem:[#allocation23_spill]] %s2200_s7 }
   0x5   :  { %14 = vsyncpa [#allocation7], 0 }
   0x6   :  { %16 = vsyncpa [#allocation7 + $0x1], 0 }
   0x7   :  { %17 = vsyncpa [#allocation10], 0 }
   0x8   :  { %18 = vsyncpa [#allocation13], 0 }
   0x9   :  { %19 = vsyncpa [#allocation8], 0 }
   0xa   :  { %21 = vsyncpa [#allocation8 + $0x1], 0  ;;  %s1872_s30 = smov 0   ;;  %s1874_s10 = smov 0  }
   0xb   :  { %s1876_s11 = smov 0   ;;  %s1878_s12 = smov 0  }
   0xc LB: > { %s1806_s13 = smov [#allocation9]   ;;  %s1893_s15 = sadd.s32 4294967295, %s1804_s12   ;;  %s1804_s12 = sphi %s1878_s12, %s2234_s12   ;;  %s1800_s11 = sphi %s1876_s11, %s2233_s11   ;;  %s1796_s10 = sphi %s1874_s10, %s2232_s10   ;;  %s1792_s30 = sphi %s1872_s30, %s2231_s30  }
   0xd   : > { %s264_s14 = sshll.u32 %s1806_s13, 4  ;;  %p1304_p0 = scmp.ge.s32.totalorder %s1804_s12, 1  ;;  %s265_s14 = int_to_ptr.vmem [resolvable:$true] %s264_s14 }
   0xe   : > { %p2203_p1 = scmp.eq.s32.totalorder %s1893_s15, 0  ;;  %p252_p2 = scmp.lt.s32.totalorder %s1804_s12, 3 }
   0xf   : > { %s1807_s17 = smov [#allocation12]   ;;  %s1808_s20 = smov [#allocation11]  }
  0x10   : > { %p1898_p3 = pnand %p1304_p0, %p252_p2  ;;  %s290_s18 = sshll.u32 %s1807_s17, 4  ;;  %s1911_s18 = int_to_ptr.vmem [resolvable:$true] %s290_s18 }
  0x11   : > { %s277_s21 = sshll.u32 %s1808_s20, 4  ;;  %s1611_s22 = scalar_lea.vmem %s265_s14, 256  ;;  %s1913_s21 = int_to_ptr.vmem [resolvable:$true] %s277_s21 }
  0x12   : > { %s2211_s16 = scalar_select %p1898_p3, 1, 0 }
  0x13   : > { %p1490_p5 = pneg %p1898_p3  ;;  %p1612_p8 = scmp.ne.s32.totalorder %s265_s14, %s1611_s22 }
  0x14   : > { %p1619_p11 = scmp.lt.s32.totalorder %s265_s14, %s265_s14  ;;  %p1620_p12 = scmp.lt.s32.totalorder %s1611_s22, %s1611_s22 }
  0x15   : > { %p1907_p6 = pnand %p1490_p5, %p2203_p1 }
  0x16   : > { %p1621_p13 = por %p1620_p12, %p1619_p11 }
  0x17   : > { %p1602_p7 = pneg %p1907_p6 }
  0x19   : > { %p1614_p9 = pnand %p1612_p8, %p1602_p7 }
  0x1b   : > { %p1615_p10 = pneg %p1614_p9 }
  0x1d   : > { %p1622_p0 = pnand %p1621_p13, %p1615_p10 }
  0x1f   : > { %1625 = shalt.err (!%p1622_p0)
}
  0x20   : > { %s1809_s23 = smov 64   ;;  %s1810_s24 = smov 4  }
  0x21   : > { %s2213_s1 = sld [smem:[#allocation20_spill]]  ;;  %s1637_s27 = scalar_lea.vmem %s1911_s18, 256 }
  0x22   : > { %p1638_p2 = scmp.ne.s32.totalorder %s1911_s18, %s1637_s27  ;;  %p1645_p9 = scmp.lt.s32.totalorder %s1911_s18, %s1911_s18 }
  0x23   : > { %p1646_p10 = scmp.lt.s32.totalorder %s1637_s27, %s1637_s27 }
  0x24   : > { %p1640_p5 = pnand %p1638_p2, %p1602_p7 }
  0x25   : > { %p1647_p11 = por %p1646_p10, %p1645_p9 }
  0x26   : > { %p1641_p8 = pneg %p1640_p5 }
  0x27   : > { %1493 = dma.hbm_to_vmem [thread:$0]  (!%p1907_p6), %s2213_s1, 256, %s265_s14, [#allocation10], %s1809_s23, %s1809_s23, %s1810_s24  }
  0x28   : > { %p1648_p12 = pnand %p1647_p11, %p1641_p8 }
  0x2a   : > { %1651 = shalt.err (!%p1648_p12)
}
  0x2b   : > { %s2214_s3 = sld [smem:[#allocation22_spill]]  ;;  %s1663_s13 = scalar_lea.vmem %s1913_s21, 256 }
  0x2c   : > { %p1664_p13 = scmp.ne.s32.totalorder %s1913_s21, %s1663_s13  ;;  %p1671_p5 = scmp.lt.s32.totalorder %s1913_s21, %s1913_s21 }
  0x2d   : > { %p1672_p8 = scmp.lt.s32.totalorder %s1663_s13, %s1663_s13 }
  0x2e   : > { %p1666_p0 = pnand %p1664_p13, %p1602_p7 }
  0x2f   : > { %p1673_p9 = por %p1672_p8, %p1671_p5 }
  0x30   : > { %p1667_p2 = pneg %p1666_p0 }
  0x31   : > { %1499 = dma.hbm_to_vmem [thread:$0]  (!%p1907_p6), %s2214_s3, 256, %s1911_s18, [#allocation13], %s1809_s23, %s1809_s23, %s1810_s24  }
  0x32   : > { %p1674_p10 = pnand %p1673_p9, %p1667_p2 }
  0x34   : > { %1677 = shalt.err (!%p1674_p10)
}
  0x35   : > { %s2215_s2 = sld [smem:[#allocation21_spill]]  ;;  %s1811_s18 = smov [#allocation14]  }
  0x36   : > { %s312_s20 = sshll.u32 %s1811_s18, 4  ;;  %s313_s20 = int_to_ptr.vmem [resolvable:$true] %s312_s20 }
  0x37   : > { %s1689_s22 = scalar_lea.vmem %s313_s20, 256  ;;  %p1697_p0 = scmp.lt.s32.totalorder %s313_s20, %s313_s20 }
  0x38   : > { %p1690_p11 = scmp.ne.s32.totalorder %s313_s20, %s1689_s22  ;;  %p1698_p2 = scmp.lt.s32.totalorder %s1689_s22, %s1689_s22 }
  0x3a   : > { %p1692_p12 = pnand %p1690_p11, %p1602_p7  ;;  %p1699_p5 = por %p1698_p2, %p1697_p0 }
  0x3b   : > { %1496 = dma.hbm_to_vmem [thread:$0]  (!%p1907_p6), %s2215_s2, 256, %s1913_s21, [#allocation10], %s1809_s23, %s1809_s23, %s1810_s24  }
  0x3c   : > { %p1693_p13 = pneg %p1692_p12 }
  0x3e   : > { %p1700_p8 = pnand %p1699_p5, %p1693_p13 }
  0x40   : > { %1703 = shalt.err (!%p1700_p8)
}
  0x41   : > { %s2216_s7 = sld [smem:[#allocation23_spill]]  ;;  %s1303_s19 = sadd.s32 4294967294, %s1804_s12  }
  0x42   : > { %s1973_s26 = sadd.s32 1, %s1804_s12   ;;  %s34_s28 = sadd.s32 1, %s1800_s11 }
  0x43   : > { %s31_s27 = ssub.s32 %s1804_s12, %s1973_s26  ;;  %p41_p9 = scmp.ne.s32.totalorder %s1800_s11, %s1796_s10 }
  0x44   : > { %p32_p7 = scmp.eq.s32.totalorder %s31_s27, 0  ;;  %p42_p10 = scmp.eq.s32.totalorder %s1804_s12, 0 }
  0x45   : > { %p47_p11 = scmp.ne.s32.totalorder %s1796_s10, %s1792_s30  ;;  %p239_p13 = scmp.eq.s32.totalorder %s1893_s15, 1 }
  0x46   : > { %s1984_s29 = scalar_select %p32_p7, %s1800_s11, %s34_s28  }
  0x47   : > { %1502 = dma.hbm_to_vmem [thread:$0]  (!%p1907_p6), %s2216_s7, 256, %s313_s20, [#allocation13], %s1809_s23, %s1809_s23, %s1810_s24  }
  0x48   : > { %p1986_p12 = por %p42_p10, %p41_p9  ;;  %p1992_p6 = por %p2203_p1, %p47_p11 }
  0x49   : > { %p245_p0 = scmp.eq.s32.totalorder %s1303_s19, 1  ;;  %p1515_p2 = scmp.lt.s32.totalorder %s1804_s12, 2 }
  0x4a   : > { %s2218_s23 = scalar_select %p1992_p6, 1, 0 }
  0x4b   : > { %s329_s24 = sand.u32 1, %s1800_s11   ;;  %p1999_p5 = por %p239_p13, %p41_p9 }
  0x4c   : > { %p2003_p8 = por %p245_p0, %p47_p11  ;;  %s1310_s18 = sshll.u32 %s329_s24, 2 }
  0x4d   : > { %s2219_s14 = scalar_select %p1999_p5, 1, 0 }
  0x4e   : > { %s2220_s17 = scalar_select %p2003_p8, 1, 0 }
  0x4f   : > { %s1311_s20 = sshll.u32 %s1804_s12, 6  ;;  %s333_s19 = scalar_lea.vmem [#allocation6], %s1310_s18 }
  0x50   : > { %s2011_s25 = scalar_lea.hbm %s2193_s0, %s1311_s20  ;;  %s340_s27 = sshll.u32 %s333_s19, 4  ;;  %s341_s27 = int_to_ptr.vmem [resolvable:$true] %s340_s27 }
  0x51   : > { %p2015_p7 = pnand %p1515_p2, %p1986_p12  ;;  %s330_s1 = scalar_lea.sflag [#allocation7], %s329_s24 }
  0x52   : > { %s1704_s2 = scalar_lea.hbm %s2011_s25, 64  ;;  %s1709_s21 = scalar_lea.hbm %s2193_s0, 128 }
  0x53   : > { %p1705_p9 = scmp.ne.s32.totalorder %s2011_s25, %s1704_s2  ;;  %p1706_p10 = pneg %p2015_p7 }
  0x54   : > { %p1710_p0 = scmp.lt.s32.totalorder %s2011_s25, %s2193_s0  ;;  %p1711_p12 = scmp.lt.s32.totalorder %s1709_s21, %s1704_s2 }
  0x55   : > { %p1707_p11 = pnand %p1706_p10, %p1705_p9 }
  0x56   : > { %p1712_p2 = por %p1711_p12, %p1710_p0 }
  0x57   : > { %p1708_p13 = pneg %p1707_p11 }
  0x59   : > { %p1713_p4 = pnand %p1712_p2, %p1708_p13 }
  0x5b   : > { %1716 = shalt.err (!%p1713_p4)
}
  0x5c   : > { %s1717_s13 = scalar_lea.vmem %s341_s27, 64  ;;  %s1812_s24 = smov [#allocation6]  }
  0x5d   : > { %p1718_p1 = scmp.ne.s32.totalorder %s341_s27, %s1717_s13  ;;  %s1722_s3 = sshll.u32 %s1812_s24, 4  ;;  %s1723_s3 = int_to_ptr.vmem [resolvable:$false] %s1722_s3 }
  0x5e   : > { %s1724_s7 = scalar_lea.vmem %s1723_s3, 128  ;;  %p1725_p9 = scmp.lt.s32.totalorder %s341_s27, %s1723_s3 }
  0x5f   : > { %p1720_p8 = pnand %p1718_p1, %p1706_p10  ;;  %p1726_p11 = scmp.lt.s32.totalorder %s1724_s7, %s1717_s13 }
  0x61   : > { %p1721_p5 = pneg %p1720_p8  ;;  %p1727_p6 = por %p1726_p11, %p1725_p9 }
  0x63   : > { %p1728_p3 = pnand %p1727_p6, %p1721_p5 }
  0x65   : > { %1731 = shalt.err (!%p1728_p3)
}
  0x66   : > { %1506 = dma.hbm_to_vmem [thread:$0]  (!%p2015_p7), %s2011_s25, 64, %s341_s27, %s330_s1  }
  0x67   : > { %p2222_p13 = scmp.ne.s32.totalorder %s2211_s16, 0 }
  0x68   : > { %s2036_s2 = sand.u32 (!%p2222_p13), 1, %s1796_s10   ;;  %p2223_p1 = scmp.ne.s32.totalorder (!%p2222_p13), %s2218_s23, 0 }
  0x69   : > { %349 = sbr.rel (%p2222_p13) target bundleno = 1354 (0x54a), region = 56  ;;  %s1313_s20 = sshll.u32 (!%p2222_p13), %s2036_s2, 2 }
  0x6a   : > { %s352_s22 = scalar_lea.sflag (!%p2222_p13), [#allocation7], %s2036_s2  ;;  %s355_s3 = scalar_lea.vmem (!%p2222_p13), [#allocation6], %s1313_s20 }
  0x6e   : > { %1775 = dma.done.wait (%p2223_p1), %s352_s22, 64  }
  0x6f   : > { %1777 = vsyncadd (%p2223_p1), %s352_s22, 4294967232  ;;  %p2224_p3 = scmp.eq.s32.totalorder %s1893_s15, 0 }
  0x71   : > { %1779 = dma.done.wait (%p2224_p3), [#allocation10], 512   ;;  %p2225_p4 = pmov %p2224_p3 }
  0x72   : > { %p2226_p6 = pmov %p2224_p3 }
  0x73   : > { %1781 = vsyncadd (%p2225_p4), [#allocation10], 4294966784 }
  0x74   : > { %1783 = dma.done.wait (%p2226_p6), [#allocation13], 512   ;;  %p2227_p5 = pmov %p2224_p3 }
  0x75   : > { %v1813_v0 = vmov 0.0   ;;  %vm1814_vm0 = vmmov 0   ;;  %v1567_v1 = vld [vmem:[#allocation11 + $0x8] sm:$0xff]   ;;  %v1568_v2 = vld [vmem:[#allocation9 + $0x8] sm:$0xff]   ;;  %v1569_v3 = vld [vmem:[#allocation11] sm:$0xff]   ;;  %vm431_vm1 = vcmask 261120  }
  0x76   : > { %1785 = vsyncadd (%p2227_p5), [#allocation13], 4294966784  ;;  %1398 = vmatprep.subr.bf16.mxu1 %v1813_v0  ;;  %1390 = vmatprep.subr.bf16.mxu0 %v1813_v0  ;;  %v1570_v4 = vld [vmem:[#allocation9] sm:$0xff]   ;;  %v407_v5 = vld [vmem:[%s355_s3] sm:$0xf]  ;;  %vm476_vm2 = vcmask 257024  }
  0x77   : > { %1402 = vmatprep.mubr.msk.bf16.mxu1 %vm1814_vm0, %v1813_v0  ;;  %1394 = vmatprep.mubr.msk.bf16.mxu0 %vm1814_vm0, %v1813_v0  ;;  %v1323_v6 = vld [vmem:[%s2198_s5] ss:$0 sm:$0xff]  ;;  %vm611_vm3 = vcmask 64512   ;;  %s1815_s25 = smov 112   ;;  %s1816_s27 = smov 120   ;;  %v1578_v29 = vld [vmem:[#allocation12] sm:$0xff]  }
  0x78   : > { %1399 = vmatpush3.bf16.msra.mxu1 %v1567_v1  ;;  %1391 = vmatpush3.bf16.msra.mxu0 %v1568_v2  ;;  %v1319_v7 = vld [vmem:[%s2197_s4] ss:$0 sm:$0xff]  ;;  %s1817_s28 = smov 104   ;;  %vm671_vm4 = vcmask 1043456   ;;  %vm718_vm5 = vcmask 60416   ;;  %s1818_s19 = smov 8  }
  0x79   : > { %1400 = vmatprep.subr.bf16.mxu1 %v1813_v0  ;;  %1392 = vmatprep.subr.bf16.mxu0 %v1813_v0  ;;  %v1577_v28 = vld [vmem:[#allocation12 + $0x8] sm:$0xff]   ;;  %s1819_s13 = smov 16   ;;  %s1820_s24 = smov 24   ;;  %vm849_vm6 = vcmask 126016   ;;  %vm980_vm7 = vcmask 191616   ;;  %vm1111_vm8 = vcmask 257216  }
  0x7a   : > { %v1327_v44 = vld [vmem:[%s2199_s6] ss:$0 sm:$0xff]  ;;  %s1318_s20 = sshll.u32 %s2036_s2, 3  ;;  %s1356_s1 = sshll.u32 %s1893_s15, 7 }
  0x7b   : > { %s405_s7 = scalar_lea.vmem [#allocation15], %s1318_s20  ;;  %p2228_p7 = scmp.ne.s32.totalorder %s2219_s14, 0 }
  0x7c   : > { %1401 = vmatpush3.bf16.msra.mxu1 %v1569_v3  ;;  %1393 = vmatpush3.bf16.msra.mxu0 %v1570_v4  ;;  %s1195_s16 = sshll.u32 %s405_s7, 4  ;;  %s1821_s21 = smov [#allocation15]   ;;  %s2151_s16 = int_to_ptr.vmem [resolvable:$true] %s1195_s16 }
  0x7d   : > { %1414 = vmatprep.subr.bf16.mxu1 %v1813_v0  ;;  %1406 = vmatprep.subr.bf16.mxu0 %v1813_v0  ;;  %s1732_s15 = scalar_lea.vmem %s2151_s16, 128  ;;  %s1736_s18 = sshll.u32 %s1821_s21, 4  ;;  %s1737_s18 = int_to_ptr.vmem [resolvable:$false] %s1736_s18 }
  0x7e   : > { %p1733_p8 = scmp.ne.s32.totalorder %s2151_s16, %s1732_s15  ;;  %p1739_p12 = scmp.lt.s32.totalorder %s2151_s16, %s1737_s18 }
  0x7f   : > { %1403 = vmatmul.mubr.msk.bf16.vlgmr.msra.gmra.mxu1 %vm431_vm1, %v407_v5  ;;  %1395 = vmatmul.mubr.msk.bf16.vlgmr.msra.gmra.mxu0 %vm431_vm1, %v407_v5 }
  0x80   : > { %1416 = vmatprep.mubr.msk.bf16.mxu1 %vm1814_vm0, %v1813_v0  ;;  %1410 = vmatprep.mubr.msk.bf16.mxu0 %vm1814_vm0, %v1813_v0  ;;  %p1734_p10 = pnand %p1733_p8, %p2228_p7 }
  0x81   : > { %1407 = vmatpush3.bf16.msra.mxu0 %v1577_v28 }
  0x82   : > { %1408 = vmatprep.subr.bf16.mxu0 %v1813_v0  ;;  %p1735_p0 = pneg %p1734_p10 }
  0x85   : > { %1409 = vmatpush3.bf16.msra.mxu0 %v1578_v29 }
  0x86   : > { %1420 = vmatprep.subr.bf16.mxu0 %v1813_v0 }
  0x88   : > { %1411 = vmatmul.mubr.msk.bf16.vlgmr.msra.gmra.mxu0 %vm431_vm1, %v407_v5 }
  0x89   : > { %1422 = vmatprep.mubr.msk.bf16.mxu0 %vm1814_vm0, %v1813_v0 }
 0x13f   : > { %v535_v8 = vpop.f32.mrf.mxu1  ;;  %v469_v10 = vpop.f32.mrf.mxu0 }
 0x140   : > { %v536_v9 = vadd.f32 %v1323_v6, %v535_v8  ;;  %v470_v11 = vadd.f32 %v1319_v7, %v469_v10 }
 0x141   : > { %v1404_v12 = vpop.f32.mrf.mxu1  ;;  %v1396_v14 = vpop.f32.mrf.mxu0 }
 0x142   : > { %v541_v13 = vpack.c.bf16 %v536_v9, %v536_v9  ;;  %v475_v15 = vpack.c.bf16 %v470_v11, %v470_v11 }
 0x143   : > { %v538_v16 = vpop.f32.mrf.mxu1  ;;  %v472_v17 = vpop.f32.mrf.mxu0 }
 0x144   : > { %542 = vst.msk [vmem:[#allocation3] sm:$0xf] %vm476_vm2, %v541_v13  ;;  %477 = vst.msk [vmem:[#allocation2] sm:$0xf] %vm476_vm2, %v475_v15 }
 0x145   : > { %v1405_v18 = vpop.f32.mrf.mxu1  ;;  %v1397_v19 = vpop.f32.mrf.mxu0 }
 0x148   : > { %v600_v46 = vpop.f32.mrf.mxu0 }
 0x149   : > { %v601_v47 = vadd.f32 %v1327_v44, %v600_v46 }
 0x14a   : > { %v1412_v48 = vpop.f32.mrf.mxu0 }
 0x14b   : > { %v609_v20 = vld [vmem:[#allocation3] sm:$0xf]  ;;  %v1573_v24 = vld [vmem:[#allocation2] ss:$0 sps:$4 sm:$0xff]   ;;  %v606_v49 = vpack.c.bf16 %v601_v47, %v601_v47 }
 0x14c   : > { %v1571_v21 = vld [vmem:[#allocation3] ss:$0 sps:$4 sm:$0xff]   ;;  %v616_v22 = vsel %vm611_vm3, %v609_v20, 0  ;;  %v1574_v25 = vld [vmem:[#allocation2] ss:$0 sps:$4 sm:$0xff]   ;;  %v603_v50 = vpop.f32.mrf.mxu0 }
 0x14d   : > { %v1572_v23 = vld [vmem:[#allocation3] ss:$0 sps:$4 sm:$0xff]   ;;  %1415 = vmatpush3.bf16.xpose.msra.mxu1 %v616_v22  ;;  %862 = vrot.lane.b32.xlu1 %v1571_v21, %s1815_s25  ;;  %v608_v26 = vld [vmem:[#allocation2] sm:$0xf]  ;;  %607 = vst.msk [vmem:[#allocation4] sm:$0xf] %vm476_vm2, %v606_v49 }
 0x14e   : > { %731 = vrot.lane.b32.xlu0 %v1572_v23, %s1816_s27  ;;  %1426 = vmatprep.subr.bf16.mxu1 %v1813_v0  ;;  %v1575_v27 = vld [vmem:[#allocation2] ss:$0 sps:$4 sm:$0xff]   ;;  %v1576_v30 = vld [vmem:[#allocation3] ss:$0 sps:$4 sm:$0xff]   ;;  %v1413_v51 = vpop.f32.mrf.mxu0 }
 0x151   : > { %857 = vrot.lane.b32.xlu1 %v1573_v24, %s1815_s25 }
 0x152   : > { %726 = vrot.lane.b32.xlu0 %v1574_v25, %s1816_s27 }
 0x154   : > { %1417 = vmatmul.mubr.msk.bf16.vlgmr.msra.gmra.mxu1 %vm611_vm3, %v608_v26  ;;  %v610_v52 = vld [vmem:[#allocation4] sm:$0xf] }
 0x155   : > { %988 = vrot.lane.b32.xlu1 %v1575_v27, %s1817_s28  ;;  %1428 = vmatprep.mubr.msk.bf16.mxu1 %vm1814_vm0, %v1813_v0  ;;  %v673_v53 = vsel %vm671_vm4, %v610_v52, 0  ;;  %v1579_v1 = vld [vmem:[#allocation4] ss:$0 sps:$4 sm:$0xff]  }
 0x156   : > { %993 = vrot.lane.b32.xlu0 %v1576_v30, %s1817_s28  ;;  %1421 = vmatpush3.bf16.msra.mxu0 %v673_v53  ;;  %v1580_v5 = vld [vmem:[#allocation4] ss:$0 sps:$4 sm:$0xff]  }
 0x157   : > { %1432 = vmatprep.subr.bf16.mxu0 %v1813_v0  ;;  %v1581_v11 = vld [vmem:[#allocation4] ss:$0 sps:$4 sm:$0xff]  }
 0x1bf   : > { %v863_v33 = vpop.permute.xlu1 %862 }
 0x1c0   : > { %v732_v31 = vpop.permute.xlu0 %731  ;;  %v868_v35 = vsel %vm611_vm3, %v863_v33, 0 }
 0x1c1   : > { %v737_v32 = vsel %vm611_vm3, %v732_v31, 0 }
 0x1c2   : > { %1427 = vmatpush3.bf16.xpose.msra.mxu1 %v737_v32 }
 0x1c3   : > { %1438 = vmatprep.subr.bf16.mxu1 %v1813_v0  ;;  %v858_v37 = vpop.permute.xlu1 %857 }
 0x1c4   : > { %v727_v34 = vpop.permute.xlu0 %726 }
 0x1c7   : > { %v989_v39 = vpop.permute.xlu1 %988 }
 0x1c8   : > { %v994_v36 = vpop.permute.xlu0 %993 }
 0x1c9   : > { %1429 = vmatmul.mubr.msk.bf16.vlgmr.msra.gmra.mxu1 %vm611_vm3, %v727_v34  ;;  %v999_v38 = vsel %vm611_vm3, %v994_v36, 0 }
 0x1ca   : > { %1439 = vmatpush3.bf16.xpose.msra.mxu1 %v868_v35  ;;  %1440 = vmatprep.mubr.msk.bf16.mxu1 %vm1814_vm0, %v1813_v0 }
 0x1cb   : > { %1450 = vmatprep.subr.bf16.mxu1 %v1813_v0 }
 0x1d1   : > { %1441 = vmatmul.mubr.msk.bf16.vlgmr.msra.gmra.mxu1 %vm611_vm3, %v858_v37 }
 0x1d2   : > { %1451 = vmatpush3.bf16.xpose.msra.mxu1 %v999_v38  ;;  %1452 = vmatprep.mubr.msk.bf16.mxu1 %vm1814_vm0, %v1813_v0 }
 0x1d3   : > { %1462 = vmatprep.subr.bf16.mxu1 %v1813_v0 }
 0x1d9   : > { %1453 = vmatmul.mubr.msk.bf16.vlgmr.msra.gmra.mxu1 %vm611_vm3, %v989_v39 }
 0x1da   : > { %1466 = vmatprep.mubr.msk.bf16.mxu1 %vm1814_vm0, %v1813_v0 }
 0x214   : > { %v652_v40 = vpop.f32.mrf.mxu1 }
 0x215   : > { %v658_v41 = vsel %vm611_vm3, %v652_v40, -inf }
 0x216   : > { %659 = vmax.xlane.f32.xlu0 %v658_v41  ;;  %v1418_v42 = vpop.f32.mrf.mxu1 }
 0x218   : > { %v655_v43 = vpop.f32.mrf.mxu1 }
 0x21a   : > { %v1419_v45 = vpop.f32.mrf.mxu1 }
 0x289   : > { %v773_v54 = vpop.f32.mrf.mxu1 }
 0x28a   : > { %v779_v55 = vsel %vm611_vm3, %v773_v54, -inf }
 0x28b   : > { %780 = vmax.xlane.f32.xlu1 %v779_v55  ;;  %v1430_v56 = vpop.f32.mrf.mxu1 }
 0x28d   : > { %v776_v57 = vpop.f32.mrf.mxu1 }
 0x28f   : > { %v1431_v58 = vpop.f32.mrf.mxu1 }
 0x291   : > { %v904_v59 = vpop.f32.mrf.mxu1 }
 0x292   : > { %v910_v60 = vsel %vm611_vm3, %v904_v59, -inf }
 0x293   : > { %911 = vmax.xlane.f32.xlu0 %v910_v60  ;;  %v1442_v61 = vpop.f32.mrf.mxu1 }
 0x295   : > { %v907_v62 = vpop.f32.mrf.mxu1 }
 0x296   : > { %v1583_v62 = vld [vmem:[#allocation14] sm:$0xff]  }
 0x297   : > { %v1443_v63 = vpop.f32.mrf.mxu1 }
 0x299   : > { %v1035_v2 = vpop.f32.mrf.mxu1 }
 0x29a   : > { %v1041_v3 = vsel %vm611_vm3, %v1035_v2, -inf }
 0x29b   : > { %1042 = vmax.xlane.f32.xlu0 %v1041_v3  ;;  %v1454_v4 = vpop.f32.mrf.mxu1 }
 0x29c   : > { %792 = vrot.lane.b32.xlu1 %v1579_v1, %s1816_s27  ;;  %s2149_s27 = scalar_lea.hbm %s2202_s9, %s1356_s1 }
 0x29d   : > { %v1038_v6 = vpop.f32.mrf.mxu1 }
 0x29f   : > { %v660_v7 = vpop.xlane.xlu0 %659  ;;  %v1455_v8 = vpop.f32.mrf.mxu1 }
 0x2a0   : > { %v661_v9 = vsub.f32 %v652_v40, %v660_v7  ;;  %1054 = vrot.lane.b32.xlu1 %v1580_v5, %s1817_s28  ;;  %s1182_s28 = scalar_lea.sflag [#allocation8], %s2036_s2 }
 0x2a2   : > { %v662_v10 = vmul.f32 1.442695, %v661_v9 }
 0x2a4   : > { %1584 = vpow2.f32 %v662_v10 }
 0x2b1   : > { %v1585_v12 = vpop.eup %1584  ;;  %923 = vrot.lane.b32.xlu0 %v1581_v11, %s1815_s25 }
 0x2b2   : > { %v667_v13 = vpack.c.bf16 %v1585_v12, %v1585_v12  ;;  %v664_v30 = vsel %vm611_vm3, %v1585_v12, 0.0 }
 0x2b4   : > { %1423 = vmatmul.mubr.msk.bf16.vlgmr.msra.gmra.mxu0 %vm611_vm3, %v667_v13  ;;  %v1351_v13 = vld [vmem:[%s2201_s8] ss:$0 sm:$0xff] }
 0x2b5   : > { %1434 = vmatprep.mubr.msk.bf16.mxu0 %vm1814_vm0, %v1813_v0 }
 0x314   : > { %v781_v14 = vpop.xlane.xlu1 %780 }
 0x315   : > { %v782_v15 = vsub.f32 %v773_v54, %v781_v14 }
 0x317   : > { %v783_v16 = vmul.f32 1.442695, %v782_v15 }
 0x318   : > { %v793_v17 = vpop.permute.xlu1 %792 }
 0x319   : > { %1586 = vpow2.f32 %v783_v16  ;;  %v798_v18 = vsel %vm671_vm4, %v793_v17, 0 }
 0x31a   : > { %1433 = vmatpush3.bf16.msra.mxu0 %v798_v18 }
 0x31b   : > { %1444 = vmatprep.subr.bf16.mxu0 %v1813_v0 }
 0x31c   : > { %v912_v19 = vpop.xlane.xlu0 %911  ;;  %v1055_v32 = vpop.permute.xlu1 %1054 }
 0x31d   : > { %v913_v20 = vsub.f32 %v904_v59, %v912_v19  ;;  %v1060_v35 = vsel %vm671_vm4, %v1055_v32, 0  ;;  %v1582_v59 = vld [vmem:[#allocation14 + $0x8] sm:$0xff]  }
 0x31e   : > { %1463 = vmatpush3.bf16.msra.mxu1 %v1582_v59 }
 0x31f   : > { %v914_v21 = vmul.f32 1.442695, %v913_v20  ;;  %1464 = vmatprep.subr.bf16.mxu1 %v1813_v0 }
 0x321   : > { %1588 = vpow2.f32 %v914_v21 }
 0x322   : > { %1465 = vmatpush3.bf16.msra.mxu1 %v1583_v62 }
 0x324   : > { %v1043_v22 = vpop.xlane.xlu0 %1042 }
 0x325   : > { %v1044_v23 = vsub.f32 %v1035_v2, %v1043_v22 }
 0x326   : > { %v1587_v24 = vpop.eup %1586 }
 0x327   : > { %v1045_v25 = vmul.f32 1.442695, %v1044_v23  ;;  %v785_v26 = vsel %vm611_vm3, %v1587_v24, 0.0  ;;  %v788_v27 = vpack.c.bf16 %v1587_v24, %v1587_v24 }
 0x328   : > { %v924_v28 = vpop.permute.xlu0 %923  ;;  %786 = vadd.xlane.f32.xlu1 %v785_v26 }
 0x329   : > { %1590 = vpow2.f32 %v1045_v25  ;;  %v929_v29 = vsel %vm671_vm4, %v924_v28, 0  ;;  %1435 = vmatmul.mubr.msk.bf16.vlgmr.msra.gmra.mxu0 %vm611_vm3, %v788_v27 }
 0x32a   : > { %1445 = vmatpush3.bf16.msra.mxu0 %v929_v29  ;;  %1446 = vmatprep.mubr.msk.bf16.mxu0 %vm1814_vm0, %v1813_v0 }
 0x32b   : > { %1456 = vmatprep.subr.bf16.mxu0 %v1813_v0 }
 0x32c   : > { %665 = vadd.xlane.f32.xlu1 %v664_v30 }
 0x32e   : > { %v1589_v31 = vpop.eup %1588 }
 0x32f   : > { %v916_v33 = vsel %vm611_vm3, %v1589_v31, 0.0  ;;  %v919_v34 = vpack.c.bf16 %v1589_v31, %v1589_v31 }
 0x330   : > { %917 = vadd.xlane.f32.xlu0 %v916_v33 }
 0x331   : > { %1447 = vmatmul.mubr.msk.bf16.vlgmr.msra.gmra.mxu0 %vm611_vm3, %v919_v34 }
 0x332   : > { %1457 = vmatpush3.bf16.msra.mxu0 %v1060_v35  ;;  %1458 = vmatprep.mubr.msk.bf16.mxu0 %vm1814_vm0, %v1813_v0 }
 0x336   : > { %v1591_v36 = vpop.eup %1590 }
 0x337   : > { %v1047_v37 = vsel %vm611_vm3, %v1591_v36, 0.0  ;;  %v1050_v38 = vpack.c.bf16 %v1591_v36, %v1591_v36 }
 0x338   : > { %1048 = vadd.xlane.f32.xlu0 %v1047_v37 }
 0x339   : > { %1459 = vmatmul.mubr.msk.bf16.vlgmr.msra.gmra.mxu0 %vm611_vm3, %v1050_v38 }
 0x374   : > { %v709_v39 = vpop.f32.mrf.mxu0 }
 0x376   : > { %v1424_v40 = vpop.f32.mrf.mxu0 }
 0x378   : > { %v712_v41 = vpop.f32.mrf.mxu0 }
 0x37a   : > { %v1425_v42 = vpop.f32.mrf.mxu0 }
 0x3b1   : > { %v787_v43 = vpop.xlane.xlu1 %786 }
 0x3b5   : > { %v666_v44 = vpop.xlane.xlu1 %665 }
 0x3b6   : > { %1592 = vrcp.f32 %v666_v44 }
 0x3b7   : > { %1594 = vrcp.f32 %v787_v43 }
 0x3b9   : > { %v918_v48 = vpop.xlane.xlu0 %917 }
 0x3ba   : > { %1596 = vrcp.f32 %v918_v48 }
 0x3c1   : > { %v1049_v50 = vpop.xlane.xlu0 %1048 }
 0x3c2   : > { %1598 = vrcp.f32 %v1049_v50 }
 0x3c3   : > { %v1593_v45 = vpop.eup %1592 }
 0x3c4   : > { %v716_v46 = vmul.f32 %v1593_v45, %v709_v39  ;;  %v1595_v49 = vpop.eup %1594 }
 0x3c6   : > { %v717_v47 = vpack.c.bf16 %v716_v46, %v716_v46 }
 0x3c7   : > { %v1597_v57 = vpop.eup %1596 }
 0x3c8   : > { %719 = vst.msk [vmem:[#allocation5] sm:$0xf] %vm718_vm5, %v717_v47 }
 0x3cf   : > { %v1599_v3 = vpop.eup %1598 }
 0x3e9   : > { %v834_v51 = vpop.f32.mrf.mxu0 }
 0x3ea   : > { %v841_v52 = vmul.f32 %v1595_v49, %v834_v51 }
 0x3eb   : > { %v1436_v53 = vpop.f32.mrf.mxu0 }
 0x3ec   : > { %v1359_v54 = vpack.c.bf16 %v841_v52, %v841_v52 }
 0x3ed   : > { %v837_v55 = vpop.f32.mrf.mxu0 }
 0x3ee   : > { %846 = vrot.lane.b32.xlu0 %v1359_v54, %s1818_s19  ;;  %s1738_s19 = scalar_lea.vmem %s1737_s18, 256 }
 0x3ef   : > { %v1437_v56 = vpop.f32.mrf.mxu0  ;;  %p1740_p2 = scmp.lt.s32.totalorder %s1738_s19, %s1732_s15 }
 0x3f1   : > { %v965_v58 = vpop.f32.mrf.mxu0  ;;  %p1741_p9 = por %p1740_p2, %p1739_p12 }
 0x3f2   : > { %v972_v60 = vmul.f32 %v1597_v57, %v965_v58 }
 0x3f3   : > { %v1448_v61 = vpop.f32.mrf.mxu0  ;;  %p1742_p11 = pnand %p1741_p9, %p1735_p0 }
 0x3f4   : > { %v1360_v63 = vpack.c.bf16 %v972_v60, %v972_v60 }
 0x3f5   : > { %v968_v1 = vpop.f32.mrf.mxu0 }
 0x3f6   : > { %977 = vrot.lane.b32.xlu1 %v1360_v63, %s1819_s13 }
 0x3f7   : > { %v1449_v2 = vpop.f32.mrf.mxu0 }
 0x3f9   : > { %v1096_v4 = vpop.f32.mrf.mxu0 }
 0x3fa   : > { %v1103_v5 = vmul.f32 %v1599_v3, %v1096_v4 }
 0x3fb   : > { %v1460_v6 = vpop.f32.mrf.mxu0 }
 0x3fc   : > { %v1361_v7 = vpack.c.bf16 %v1103_v5, %v1103_v5 }
 0x3fd   : > { %v1099_v8 = vpop.f32.mrf.mxu0 }
 0x3fe   : > { %1108 = vrot.lane.b32.xlu1 %v1361_v7, %s1820_s24 }
 0x3ff   : > { %v1461_v9 = vpop.f32.mrf.mxu0 }
 0x460   : > { %v847_v10 = vpop.permute.xlu0 %846 }
 0x461   : > { %850 = vst.msk [vmem:[#allocation5] sm:$0xf] %vm849_vm6, %v847_v10 }
 0x468   : > { %v978_v0 = vpop.permute.xlu1 %977 }
 0x469   : > { %981 = vst.msk [vmem:[#allocation5] sm:$0xf] %vm980_vm7, %v978_v0 }
 0x470   : > { %v1109_v11 = vpop.permute.xlu1 %1108 }
 0x471   : > { %1112 = vst.msk [vmem:[#allocation5] sm:$0xf] %vm1111_vm8, %v1109_v11 }
 0x478   : > { %v1113_v12 = vld [vmem:[#allocation5] sm:$0xf] }
 0x479   : > { %1467 = vmatmul.mubr.msk.bf16.vlgmr.msra.gmra.mxu1 %vm431_vm1, %v1113_v12 }
 0x539   : > { %v1174_v14 = vpop.f32.mrf.mxu1 }
 0x53a   : > { %v1175_v15 = vadd.f32 %v1351_v13, %v1174_v14 }
 0x53b   : > { %v1468_v16 = vpop.f32.mrf.mxu1 }
 0x53c   : > { %1180 = vst.msk [vmem:[%s405_s7] sm:$0xff] %vm431_vm1, %v1175_v15 }
 0x53d   : > { %v1177_v17 = vpop.f32.mrf.mxu1 }
 0x53e   : > { %1745 = shalt.err (!%p1742_p11)
}
 0x53f   : > { %s1746_s13 = scalar_lea.hbm %s2149_s27, 128  ;;  %s1750_s20 = scalar_lea.hbm %s2202_s9, 256 }
 0x540   : > { %p1747_p13 = scmp.ne.s32.totalorder %s2149_s27, %s1746_s13  ;;  %p1751_p4 = scmp.lt.s32.totalorder %s2149_s27, %s2202_s9 }
 0x541   : > { %p1752_p6 = scmp.lt.s32.totalorder %s1750_s20, %s1746_s13 }
 0x542   : > { %p1748_p1 = pnand %p1747_p13, %p2228_p7 }
 0x543   : > { %p1753_p5 = por %p1752_p6, %p1751_p4 }
 0x544   : > { %p1749_p3 = pneg %p1748_p1 }
 0x546   : > { %p1754_p8 = pnand %p1753_p5, %p1749_p3 }
 0x548   : > { %1757 = shalt.err (!%p1754_p8)
}
 0x549   : > { %1488 = dma.vmem_to_hbm [thread:$0]  (%p2228_p7), %s2151_s16, 128, %s2149_s27, %s1182_s28   ;;  %v1469_v18 = vpop.f32.mrf.mxu1 }
 0x54a PF: > { %s1207_s1 = sand.u32 1, %s1792_s30   ;;  %p2229_p10 = scmp.ne.s32.totalorder %s2220_s17, 0 }
 0x54b   : > { %p2230_p0 = scmp.ge.s32.totalorder %s1804_s12, 2  ;;  %s1208_s7 = scalar_lea.sflag [#allocation8], %s1207_s1 }
 0x54d   : > { %p1508_p12 = pnand %p2230_p0, %p2229_p10 }
 0x54f   : > { %p1509_p2 = pneg %p1508_p12 }
 0x551   : > { %1787 = dma.done.wait (%p1509_p2), %s1208_s7, 128  }
 0x552   : > { %1789 = vsyncadd (%p1509_p2), %s1208_s7, 4294967168  ;;  %p24_p9 = scmp.ge.s32.totalorder %s1973_s26, 4   ;;  %s2231_s30 = smov %s1796_s10 }
 0x553   : > { %s2232_s10 = smov %s1800_s11  ;;  %s2233_s11 = smov %s1984_s29 }
 0x554   : > { %s2234_s12 = smov %s1973_s26  ;;  %26 = sbr.rel (!%p24_p9) target bundleno = 12 (0xc), region = 117 }
 0x559   :  { %1213 = vsyncpa [#allocation7], 1 }
 0x55a   :  { %1215 = vsyncpa [#allocation7 + $0x1], 1 }
 0x55b   :  { %1216 = vsyncpa [#allocation10], 1 }
 0x55c   :  { %1217 = vsyncpa [#allocation13], 1 }
 0x55d   :  { %1218 = vsyncpa [#allocation8], 1 }
 0x55e   :  { %1220 = vsyncpa [#allocation8 + $0x1], 1 }

</bundles_post_ra>
